<compile_context>
chip_gen: v7x
topology: tpu7x:2x2x1
jax: 0.10.0
libtpu: 0.0.40
codegen_flags: <defaults>
</compile_context>

<pallas_src>
import functools

import jax
import jax.numpy as jnp
from jax import lax
from jax.experimental import pallas as pl
from jax.experimental.pallas import tpu as pltpu


def _skce_kernel(p_ref, w_ref, y_ref, out_ref, acc_ref, *,
                 n_members: int, n_classes: int, bw: float):
    # Lane-dense (pairs on the 128-wide lane axis) + sublane-dense (M*C folded
    # on the sublane axis) layout:
    #   p_ref : (2, M*C, T)   P[pp, m*C + c, i] = p_preds[2i + pp, m, c]
    #   w_ref : (2, M*C, T)   weights replicated along the class axis
    #   y_ref : (2, T)        int32 labels; padded lanes carry label == C
    #   acc_ref: (1, T) f32   running per-lane sum of h_i across the reduction
    i = pl.program_id(1)
    tile = y_ref.shape[-1]

    @pl.when(i == 0)
    def _init():
        acc_ref[...] = jnp.zeros_like(acc_ref)

    p = p_ref[...].astype(jnp.float32)            # (2, M*C, T)
    w = w_ref[...].astype(jnp.float32)            # (2, M*C, T)
    y = y_ref[...]                                # (2, T) int32

    # Weighted predictions: full-sublane elementwise multiply (VPU).
    wp = w * p                                    # (2, M*C, T)

    # p_bar[pp, c] = sum_m wp[pp, m*C + c]: unrolled static sublane slices +
    # adds (relayouts land on the otherwise idle XLU slot).
    c = n_classes
    pbar = wp[:, 0:c, :]
    for m in range(1, n_members):
        pbar = pbar + wp[:, m * c:(m + 1) * c, :]
    pbar_e = pbar[0]                              # (C, T)
    pbar_o = pbar[1]                              # (C, T)

    # Matrix-kernel scale gamma = exp(-tv / bw), tv = 0.5 * sum_c |diff|.
    tv2 = jnp.sum(jnp.abs(pbar_e - pbar_o), axis=0, keepdims=True)   # (1, T)
    gamma = jnp.exp(tv2 * (-0.5 / bw))                                # EUP

    # One-hot labels built in-kernel; padded lanes have label == C so both
    # one-hot rows are all-zero (and padded p/w are zero) -> h_i == 0 exactly.
    cls = lax.broadcasted_iota(jnp.int32, (c, tile), 0)
    oh_e = (cls == y[0:1, :]).astype(jnp.float32)                     # (C, T)
    oh_o = (cls == y[1:2, :]).astype(jnp.float32)                     # (C, T)

    dot = jnp.sum((oh_e - pbar_e) * (oh_o - pbar_o), axis=0, keepdims=True)
    acc_ref[...] += gamma * dot                                       # (1, T)

    @pl.when(i == pl.num_programs(1) - 1)
    def _finalize():
        # Per-split raw sum of h_i (mean / square are applied in the wrapper,
        # which also combines the parallel splits).
        total = jnp.sum(acc_ref[...])
        out_ref[...] = jnp.broadcast_to(total, out_ref.shape)


def _round_up(x: int, m: int) -> int:
    return ((x + m - 1) // m) * m


@functools.partial(
    jax.jit,
    static_argnames=("bw", "use_square", "ingest_bf16", "tile_pairs",
                     "num_splits"))
def skce_loss(p_preds, weights_l, y, *, bw: float = 2.0,
              use_square: bool = True, ingest_bf16: bool = True,
              tile_pairs: int = 32768, num_splits: int = 2):
    """SKCELoss forward. p_preds: (N, M, C), weights_l: (N, M), y: (N,) int.

    Note: odd N silently drops the last sample (consistent with the unbiased
    paired skce_ul estimator in the reference implementation).
    """
    n, m, c = p_preds.shape
    h = n // 2                         # number of consecutive pairs
    assert h >= 1, "SKCE unbiased (paired) estimator needs at least 2 samples"
    n_sub = m * c

    in_dtype = jnp.bfloat16 if ingest_bf16 else jnp.float32
    # Cast BEFORE packing so the fused pack pass moves half the bytes.
    p_c = p_preds[: 2 * h].astype(in_dtype)
    w_c = weights_l[: 2 * h].astype(in_dtype)

    # Pack to the lane-dense / sublane-dense layout described in the kernel.
    p_pk = p_c.reshape(h, 2, n_sub).transpose(1, 2, 0)                # (2,MC,h)
    w_rep = jnp.broadcast_to(w_c.reshape(h, 2, m, 1), (h, 2, m, c))
    w_pk = w_rep.reshape(h, 2, n_sub).transpose(1, 2, 0)              # (2,MC,h)
    y_pk = y[: 2 * h].astype(jnp.int32).reshape(h, 2).T               # (2, h)

    # Tile the pair axis (multiples of 128 lanes); cap the tile by a ~24 MiB
    # double-buffered VMEM budget; split the tiles across up to `num_splits`
    # TensorCores (only helps on v7x, harmless elsewhere).
    itemsize = jnp.dtype(in_dtype).itemsize
    per_pair = 2 * (2 * n_sub * itemsize * 2 + 2 * 4) + 8 * n_sub * 4 + 16
    t_cap = max(128, ((24 * 2**20) // per_pair) // 128 * 128)
    t = min(_round_up(tile_pairs, 128), _round_up(h, 128), t_cap)
    num_tiles = -(-h // t)
    ns = max(1, min(num_splits, num_tiles))
    tps = -(-num_tiles // ns)
    hp = ns * tps * t
    pad = hp - h
    if pad:
        p_pk = jnp.pad(p_pk, ((0, 0), (0, 0), (0, pad)))
        w_pk = jnp.pad(w_pk, ((0, 0), (0, 0), (0, pad)))
        # Out-of-range label: the in-kernel one-hot is all-zero for padding.
        y_pk = jnp.pad(y_pk, ((0, 0), (0, pad)), constant_values=c)

    vmem_est = (2 * (2 * 2 * n_sub * t * itemsize + 2 * t * 4)   # dbl-buf in
                + 4 * t                                          # accumulator
                + 12 * n_sub * t * 4 + (1 << 20))                # f32 temps
    vmem_limit = int(min(48 * 2**20, max(32 * 2**20, vmem_est)))

    grid_spec = pltpu.PrefetchScalarGridSpec(
        num_scalar_prefetch=0,
        grid=(ns, tps),
        in_specs=[
            pl.BlockSpec((2, n_sub, t), lambda s, i: (0, 0, s * tps + i)),
            pl.BlockSpec((2, n_sub, t), lambda s, i: (0, 0, s * tps + i)),
            pl.BlockSpec((2, t), lambda s, i: (0, s * tps + i)),
        ],
        out_specs=pl.BlockSpec((1, 128), lambda s, i: (0, s)),
        scratch_shapes=[pltpu.VMEM((1, t), jnp.float32)],
    )
    partial_sums = pl.pallas_call(
        functools.partial(_skce_kernel, n_members=m, n_classes=c, bw=bw),
        out_shape=jax.ShapeDtypeStruct((1, ns * 128), jnp.float32),
        grid_spec=grid_spec,
        compiler_params=pltpu.CompilerParams(
            dimension_semantics=("parallel", "arbitrary"),
            vmem_limit_bytes=vmem_limit,
        ),
    )(p_pk, w_pk, y_pk)

    loss = jnp.sum(partial_sums.reshape(ns, 128)[:, 0]) * (1.0 / h)
    if use_square:
        loss = loss * loss
    # TODO(synk): lambda_bce > 0 branch (BCE on p_bar[:, 1]) not emitted; the
    # module default lambda_bce = 0.0 so it never contributes to the forward.
    return loss


def _skce_loss_ref(p_preds, weights_l, y, *, bw=2.0, use_square=True):
    """Pure-JAX reference of the same forward pass (for verification)."""
    n, m, c = p_preds.shape
    p_bar = jnp.sum(weights_l[:, :, None] * p_preds, axis=1)     # (N, C)
    h = n // 2
    pb = p_bar[: 2 * h].reshape(h, 2, c)
    yo = jax.nn.one_hot(y[: 2 * h], c, dtype=jnp.float32).reshape(h, 2, c)
    tv = 0.5 * jnp.sum(jnp.abs(pb[:, 0] - pb[:, 1]), axis=-1)
    gamma = jnp.exp(-tv / bw)
    dot = jnp.sum((yo[:, 0] - pb[:, 0]) * (yo[:, 1] - pb[:, 1]), axis=-1)
    loss = jnp.mean(gamma * dot)
    return loss * loss if use_square else loss


if __name__ == "__main__":
    key = jax.random.PRNGKey(0)
    k1, k2, k3 = jax.random.split(key, 3)

    def make_inputs(n_samples, n_predictors, n_classes):
        logits = jax.random.normal(k1, (n_samples, n_predictors, n_classes),
                                   jnp.float32)
        p_preds = jax.nn.softmax(logits, axis=-1)
        w_logits = jax.random.normal(k2, (n_samples, n_predictors), jnp.float32)
        weights_l = jax.nn.softmax(w_logits, axis=-1)
        y = jax.random.randint(k3, (n_samples,), 0, n_classes, jnp.int32)
        return p_preds, weights_l, y

    # 1) Module-documented small shapes: N=8, M=4, C=2 (binary calibration).
    p1, w1, y1 = make_inputs(8, 4, 2)
    out1 = jax.block_until_ready(skce_loss(p1, w1, y1, ingest_bf16=False))
    ref1 = jax.block_until_ready(_skce_loss_ref(p1, w1, y1))
    assert jnp.allclose(out1, ref1, atol=1e-6, rtol=1e-5), (out1, ref1)

    # 2) Multi-tile grid + 2-way core split + ragged-lane padding
    #    (small tile_pairs to force several tiles).
    p2, w2, y2 = make_inputs(2 * 700, 4, 2)
    out2 = jax.block_until_ready(
        skce_loss(p2, w2, y2, ingest_bf16=False, tile_pairs=256, num_splits=2))
    ref2 = jax.block_until_ready(_skce_loss_ref(p2, w2, y2))
    assert jnp.allclose(out2, ref2, atol=1e-6, rtol=1e-4), (out2, ref2)

    # 3) Non-power-of-two predictors / classes (M=3, C=3) and odd N
    #    (last sample dropped, like the reference).
    p3, w3, y3 = make_inputs(2 * 300 + 1, 3, 3)
    out3 = jax.block_until_ready(
        skce_loss(p3, w3, y3, ingest_bf16=False, tile_pairs=128, num_splits=2))
    ref3 = jax.block_until_ready(_skce_loss_ref(p3, w3, y3))
    assert jnp.allclose(out3, ref3, atol=1e-6, rtol=1e-4), (out3, ref3)

    # 4) Default bf16-ingestion path (f32 math in-kernel); compare against a
    #    bf16-ingesting reference so only reduction-order differences remain.
    out4 = jax.block_until_ready(skce_loss(p2, w2, y2))
    ref4 = jax.block_until_ready(_skce_loss_ref(
        p2.astype(jnp.bfloat16).astype(jnp.float32),
        w2.astype(jnp.bfloat16).astype(jnp.float32), y2))
    assert jnp.allclose(out4, ref4, atol=1e-6, rtol=1e-3), (out4, ref4)

    print("KERNEL_OK")
</pallas_src>

<mosaic_0001>
module attributes {stable_mosaic.version = 11 : i64} {
  func.func @_skce_kernel(%arg0: i32, %arg1: i32, %arg2: memref<2x8x128xf32, #tpu.memory_space<vmem>>, %arg3: memref<2x8x128xf32, #tpu.memory_space<vmem>>, %arg4: memref<2x128xi32, #tpu.memory_space<vmem>>, %arg5: memref<1x128xf32, #tpu.memory_space<vmem>>, %arg6: memref<1x128xf32, #tpu.memory_space<vmem>>) attributes {dimension_semantics = [#tpu.dimension_semantics<parallel>, #tpu.dimension_semantics<arbitrary>], iteration_bounds = array<i64: 1, 1>, scalar_prefetch = 0 : i64, scratch_operands = 1 : i64, tpu.core_type = #tpu.core_type<tc>, window_params = [{transform_indices = @transform_0, window_bounds = array<i64: 2, 8, 128>}, {transform_indices = @transform_1, window_bounds = array<i64: 2, 8, 128>}, {transform_indices = @transform_2, window_bounds = array<i64: 2, 128>}, {transform_indices = @transform_3, window_bounds = array<i64: 1, 128>}]} {
    %c0_i32 = arith.constant 0 : i32
    %0 = arith.cmpi eq, %arg1, %c0_i32 : i32
    %1 = arith.extui %0 : i1 to i32
    %c0_i32_0 = arith.constant 0 : i32
    %2 = arith.cmpi ne, %1, %c0_i32_0 : i32
    scf.if %2 {
      %cst_16 = arith.constant 0.000000e+00 : f32
      %48 = vector.broadcast %cst_16 : f32 to vector<1x128xf32>
      %c0_17 = arith.constant 0 : index
      %c0_18 = arith.constant 0 : index
      %49 = vector.load %arg6[%c0_17, %c0_18] : memref<1x128xf32, #tpu.memory_space<vmem>>, vector<1x128xf32>
      tpu.vector_store %arg6[%c0_17, %c0_18], %48 {strides = array<i32>} : memref<1x128xf32, #tpu.memory_space<vmem>>, vector<1x128xf32>,
    } else {
    }
    %c0 = arith.constant 0 : index
    %c0_1 = arith.constant 0 : index
    %c0_2 = arith.constant 0 : index
    %3 = vector.load %arg2[%c0, %c0_1, %c0_2] : memref<2x8x128xf32, #tpu.memory_space<vmem>>, vector<2x8x128xf32>
    %c0_3 = arith.constant 0 : index
    %c0_4 = arith.constant 0 : index
    %c0_5 = arith.constant 0 : index
    %4 = vector.load %arg3[%c0_3, %c0_4, %c0_5] : memref<2x8x128xf32, #tpu.memory_space<vmem>>, vector<2x8x128xf32>
    %c0_6 = arith.constant 0 : index
    %c0_7 = arith.constant 0 : index
    %5 = vector.load %arg4[%c0_6, %c0_7] : memref<2x128xi32, #tpu.memory_space<vmem>>, vector<2x128xi32>
    %6 = arith.mulf %4, %3 : vector<2x8x128xf32>
    %7 = vector.extract_strided_slice %6 {offsets = [0, 0, 0], sizes = [2, 2, 128], strides = [1, 1, 1]} : vector<2x8x128xf32> to vector<2x2x128xf32>
    %8 = vector.extract_strided_slice %6 {offsets = [0, 2, 0], sizes = [2, 2, 128], strides = [1, 1, 1]} : vector<2x8x128xf32> to vector<2x2x128xf32>
    %9 = arith.addf %7, %8 : vector<2x2x128xf32>
    %10 = vector.extract_strided_slice %6 {offsets = [0, 4, 0], sizes = [2, 2, 128], strides = [1, 1, 1]} : vector<2x8x128xf32> to vector<2x2x128xf32>
    %11 = arith.addf %9, %10 : vector<2x2x128xf32>
    %12 = vector.extract_strided_slice %6 {offsets = [0, 6, 0], sizes = [2, 2, 128], strides = [1, 1, 1]} : vector<2x8x128xf32> to vector<2x2x128xf32>
    %13 = arith.addf %11, %12 : vector<2x2x128xf32>
    %14 = vector.extract_strided_slice %13 {offsets = [0, 0, 0], sizes = [1, 2, 128], strides = [1, 1, 1]} : vector<2x2x128xf32> to vector<1x2x128xf32>
    %15 = vector.shape_cast %14 : vector<1x2x128xf32> to vector<2x128xf32>
    %16 = vector.extract_strided_slice %13 {offsets = [1, 0, 0], sizes = [1, 2, 128], strides = [1, 1, 1]} : vector<2x2x128xf32> to vector<1x2x128xf32>
    %17 = vector.shape_cast %16 : vector<1x2x128xf32> to vector<2x128xf32>
    %18 = arith.subf %15, %17 : vector<2x128xf32>
    %19 = math.absf %18 : vector<2x128xf32>
    %cst = arith.constant dense<0.000000e+00> : vector<128xf32>
    %20 = vector.multi_reduction <add>, %19, %cst [0] : vector<2x128xf32> to vector<128xf32>
    %21 = vector.shape_cast %20 : vector<128xf32> to vector<1x128xf32>
    %cst_8 = arith.constant -2.500000e-01 : f32
    %22 = vector.broadcast %cst_8 : f32 to vector<1x128xf32>
    %23 = arith.mulf %21, %22 : vector<1x128xf32>
    %24 = math.exp %23 : vector<1x128xf32>
    %25 = tpu.iota {dimensions = array<i32: 0>} : vector<2x128xi32>
    %26 = vector.extract_strided_slice %5 {offsets = [0, 0], sizes = [1, 128], strides = [1, 1]} : vector<2x128xi32> to vector<1x128xi32>
    %27 = vector.broadcast %26 : vector<1x128xi32> to vector<2x128xi32>
    %28 = arith.cmpi eq, %25, %27 : vector<2x128xi32>
    %29 = arith.extui %28 : vector<2x128xi1> to vector<2x128xi32>
    %30 = arith.sitofp %29 : vector<2x128xi32> to vector<2x128xf32>
    %31 = vector.extract_strided_slice %5 {offsets = [1, 0], sizes = [1, 128], strides = [1, 1]} : vector<2x128xi32> to vector<1x128xi32>
    %32 = vector.broadcast %31 : vector<1x128xi32> to vector<2x128xi32>
    %33 = arith.cmpi eq, %25, %32 : vector<2x128xi32>
    %34 = arith.extui %33 : vector<2x128xi1> to vector<2x128xi32>
    %35 = arith.sitofp %34 : vector<2x128xi32> to vector<2x128xf32>
    %36 = arith.subf %30, %15 : vector<2x128xf32>
    %37 = arith.subf %35, %17 : vector<2x128xf32>
    %38 = arith.mulf %36, %37 : vector<2x128xf32>
    %cst_9 = arith.constant dense<0.000000e+00> : vector<128xf32>
    %39 = vector.multi_reduction <add>, %38, %cst_9 [0] : vector<2x128xf32> to vector<128xf32>
    %40 = vector.shape_cast %39 : vector<128xf32> to vector<1x128xf32>
    %c0_10 = arith.constant 0 : index
    %c0_11 = arith.constant 0 : index
    %41 = vector.load %arg6[%c0_10, %c0_11] : memref<1x128xf32, #tpu.memory_space<vmem>>, vector<1x128xf32>
    %42 = arith.mulf %24, %40 : vector<1x128xf32>
    %43 = arith.addf %41, %42 : vector<1x128xf32>
    %c0_12 = arith.constant 0 : index
    %c0_13 = arith.constant 0 : index
    %44 = vector.load %arg6[%c0_12, %c0_13] : memref<1x128xf32, #tpu.memory_space<vmem>>, vector<1x128xf32>
    tpu.vector_store %arg6[%c0_12, %c0_13], %43 {strides = array<i32>} : memref<1x128xf32, #tpu.memory_space<vmem>>, vector<1x128xf32>,
    %c0_i32_14 = arith.constant 0 : i32
    %45 = arith.cmpi eq, %arg1, %c0_i32_14 : i32
    %46 = arith.extui %45 : i1 to i32
    %c0_i32_15 = arith.constant 0 : i32
    %47 = arith.cmpi ne, %46, %c0_i32_15 : i32
    scf.if %47 {
      %c0_16 = arith.constant 0 : index
      %c0_17 = arith.constant 0 : index
      %48 = vector.load %arg6[%c0_16, %c0_17] : memref<1x128xf32, #tpu.memory_space<vmem>>, vector<1x128xf32>
      %49 = vector.shape_cast %48 : vector<1x128xf32> to vector<1x1x128xf32>
      %cst_18 = arith.constant dense<0.000000e+00> : vector<1xf32>
      %50 = vector.multi_reduction <add>, %49, %cst_18 [1, 2] : vector<1x1x128xf32> to vector<1xf32>
      %51 = vector.shape_cast %50 : vector<1xf32> to vector<1x1x1xf32>
      %52 = vector.extract %51[0, 0, 0] : f32 from vector<1x1x1xf32>
      %53 = vector.broadcast %52 : f32 to vector<1x128xf32>
      %c0_19 = arith.constant 0 : index
      %c0_20 = arith.constant 0 : index
      %54 = vector.load %arg5[%c0_19, %c0_20] : memref<1x128xf32, #tpu.memory_space<vmem>>, vector<1x128xf32>
      tpu.vector_store %arg5[%c0_19, %c0_20], %53 {strides = array<i32>} : memref<1x128xf32, #tpu.memory_space<vmem>>, vector<1x128xf32>,
    } else {
    }
    return
  }
  func.func @transform_0(%arg0: i32, %arg1: i32) -> (i32, i32, i32) {
    %c1_i32 = arith.constant 1 : i32
    %0 = arith.muli %arg0, %c1_i32 : i32
    %1 = arith.addi %0, %arg1 : i32
    %c0_i32 = arith.constant 0 : i32
    %c0_i32_0 = arith.constant 0 : i32
    %c0_i32_1 = arith.constant 0 : i32
    return %c0_i32, %c0_i32_0, %1 : i32, i32, i32
  }
  func.func @transform_1(%arg0: i32, %arg1: i32) -> (i32, i32, i32) {
    %c1_i32 = arith.constant 1 : i32
    %0 = arith.muli %arg0, %c1_i32 : i32
    %1 = arith.addi %0, %arg1 : i32
    %c0_i32 = arith.constant 0 : i32
    %c0_i32_0 = arith.constant 0 : i32
    %c0_i32_1 = arith.constant 0 : i32
    return %c0_i32, %c0_i32_0, %1 : i32, i32, i32
  }
  func.func @transform_2(%arg0: i32, %arg1: i32) -> (i32, i32) {
    %c1_i32 = arith.constant 1 : i32
    %0 = arith.muli %arg0, %c1_i32 : i32
    %1 = arith.addi %0, %arg1 : i32
    %c0_i32 = arith.constant 0 : i32
    %c0_i32_0 = arith.constant 0 : i32
    return %c0_i32, %1 : i32, i32
  }
  func.func @transform_3(%arg0: i32, %arg1: i32) -> (i32, i32) {
    %c0_i32 = arith.constant 0 : i32
    %c0_i32_0 = arith.constant 0 : i32
    return %c0_i32, %arg0 : i32, i32
  }
}

</mosaic_0001>

<bundles_post_ra>
// kernel: skce_loss.1
= control target key start
LH: loop header
LB: loop body
LE: loop exit
PB: predicated region body
PF: predicated region fallthrough
CT: control target
= control target key end

     0   :  { %v110_v0 = vlaneseq  ;;  %v186_v1 = vmov 0.0   ;;  %vm99_vm2 = vcmask 1041408   ;;  %vm144_vm3 = vcmask 1040384   ;;  %s225_s0 = inlined_call_operand.vmem [shape: f32[2,8,128], index: 0, kind: input, shape index: {}]   ;;  %s226_s1 = inlined_call_operand.vmem [shape: f32[2,8,128], index: 1, kind: input, shape index: {}]   ;;  %s227_s2 = inlined_call_operand.vmem [shape: s32[2,128], index: 2, kind: input, shape index: {}]   ;;  %s228_s3 = inlined_call_operand.vmem [shape: f32[1,128], index: 3, kind: output, shape index: {}]  }
   0x1   :  { %69 = vst [vmem:[#allocation2] sm:$0x1] %v186_v1  ;;  %v70_v2 = vld [vmem:[%s225_s0] sm:$0xff]  ;;  %v71_v3 = vld [vmem:[%s225_s0 + $0x8] sm:$0xff] }
   0x2   :  { %v72_v4 = vld [vmem:[%s226_s1] sm:$0xff]  ;;  %v73_v5 = vld [vmem:[%s226_s1 + $0x8] sm:$0xff]  ;;  %v111_v7 = vshrl.u32 %v110_v0, 7 }
   0x3   :  { %v75_v6 = vmul.f32 %v72_v4, %v70_v2  ;;  %v74_v8 = vld [vmem:[%s227_s2] sm:$0x3]  ;;  %v76_v9 = vmul.f32 %v73_v5, %v71_v3 }
   0x4   :  { %v114_v12 = vsub.s32 0, %v111_v7  ;;  %v121_v15 = vsub.s32 1, %v111_v7 }
   0x5   :  { %v79_v10 = vrot.slane %v75_v6, 2  ;;  %v85_v11 = vrot.slane %v75_v6, 4  ;;  %v80_v13 = vrot.slane %v76_v9, 2  ;;  %v86_v14 = vrot.slane %v76_v9, 4 }
   0x6   :  { %v91_v17 = vrot.slane %v75_v6, 6  ;;  %v115_v18 = vrot.slane %v74_v8, %v114_v12  ;;  %v92_v20 = vrot.slane %v76_v9, 6  ;;  %v122_v21 = vrot.slane %v74_v8, %v121_v15 }
   0x7   :  { %v83_v16 = vadd.f32 %v79_v10, %v75_v6  ;;  %v84_v19 = vadd.f32 %v80_v13, %v76_v9 }
   0x8   :  { %vm116_vm0 = vcmp.eq.s32.totalorder %v111_v7, %v115_v18  ;;  %vm123_vm1 = vcmp.eq.s32.totalorder %v111_v7, %v122_v21  ;;  %v136_v50 = vld [vmem:[#allocation2] sm:$0x1] }
   0x9   :  { %v89_v22 = vadd.f32 %v85_v11, %v83_v16  ;;  %v90_v23 = vadd.f32 %v86_v14, %v84_v19  ;;  %v179_v24 = vsel %vm116_vm0, 1.0, %v186_v1  ;;  %v180_v26 = vsel %vm123_vm1, 1.0, %v186_v1 }
   0xb   :  { %v95_v25 = vadd.f32 %v91_v17, %v89_v22  ;;  %v96_v27 = vadd.f32 %v92_v20, %v90_v23 }
   0xd   :  { %v126_v28 = vsub.f32 %v179_v24, %v95_v25  ;;  %v97_v29 = vsub.f32 %v95_v25, %v96_v27  ;;  %v127_v30 = vsub.f32 %v180_v26, %v96_v27 }
   0xf   :  { %v98_v31 = vand.u32 2147483647, %v97_v29  ;;  %v128_v32 = vmul.f32 %v127_v30, %v126_v28 }
  0x11   :  { %v100_v33 = vsel %vm99_vm2, %v98_v31, 0.0  ;;  %v129_v35 = vsel %vm99_vm2, %v128_v32, 0.0 }
  0x12   :  { %v101_v34 = vrot.slane %v100_v33, 4  ;;  %v130_v37 = vrot.slane %v129_v35, 4 }
  0x14   :  { %v102_v36 = vadd.f32 %v101_v34, %v100_v33  ;;  %v131_v40 = vadd.f32 %v130_v37, %v129_v35 }
  0x16   :  { %v103_v38 = vrot.slane %v102_v36, 2  ;;  %v132_v43 = vrot.slane %v131_v40, 2 }
  0x18   :  { %v104_v39 = vadd.f32 %v103_v38, %v102_v36  ;;  %v133_v46 = vadd.f32 %v132_v43, %v131_v40 }
  0x1a   :  { %v105_v41 = vrot.slane %v104_v39, 1  ;;  %v134_v47 = vrot.slane %v133_v46, 1 }
  0x1c   :  { %v106_v42 = vadd.f32 %v105_v41, %v104_v39  ;;  %v135_v48 = vadd.f32 %v134_v47, %v133_v46 }
  0x1e   :  { %v107_v44 = vmul.f32 -0.25, %v106_v42 }
  0x20   :  { %v108_v45 = vmul.f32 1.442695, %v107_v44 }
  0x22   :  { %184 = vpow2.f32 %v108_v45 }
  0x2c   :  { %v185_v49 = vpop.eup %184 }
  0x2d   :  { %v137_v51 = vmul.f32 %v185_v49, %v135_v48 }
  0x2f   :  { %v138_v52 = vadd.f32 %v137_v51, %v136_v50 }
  0x31   :  { %139 = vst [vmem:[#allocation2] sm:$0x1] %v138_v52 }
  0x38   :  { %v143_v53 = vld [vmem:[#allocation2] sm:$0x1] }
  0x39   :  { %v145_v54 = vsel %vm144_vm3, %v143_v53, 0.0 }
  0x3a   :  { %146 = vadd.xlane.f32.xlu0 %v145_v54 }
  0xc7   :  { %v147_v55 = vpop.xlane.xlu0 %146 }
  0xc8   :  { %v148_v56 = vrot.slane %v147_v55, 4 }
  0xca   :  { %v149_v57 = vadd.f32 %v148_v56, %v147_v55 }
  0xcc   :  { %v150_v58 = vrot.slane %v149_v57, 2 }
  0xce   :  { %v151_v59 = vadd.f32 %v150_v58, %v149_v57 }
  0xd0   :  { %v152_v60 = vrot.slane %v151_v59, 1 }
  0xd2   :  { %v153_v61 = vadd.f32 %v152_v60, %v151_v59 }
  0xd4   :  { %181 = vpush %v153_v61 }
 0x105   :  { %s182_s0 = spop %181 }
 0x106   :  { %v155_v62 = vstv %s182_s0 }
 0x107   :  { %156 = vst [vmem:[%s228_s3] sm:$0x1] %v155_v62 }

</bundles_post_ra>
